<compile_context>
chip_gen: v5e
topology: v5e:2x2
jax: 0.10.0
libtpu: 0.0.40
codegen_flags: <defaults>
</compile_context>

<pallas_src>
import functools

import numpy as np
import jax
import jax.numpy as jnp
from jax.experimental import pallas as pl
from jax.experimental.pallas import tpu as pltpu


# ------------------------- host-side weight packing -------------------------


def _convT_as_matrix(w_pt, b_pt, Hin, Win, *, stride=2, padding=1, out_pad=1):
    """Dense matrix M of shape (Cin*Hin*Win, Cout*Hout*Wout) and NCHW-flat
    bias such that  flat_out = flat_in @ M + bias  reproduces
    torch.nn.ConvTranspose2d(kernel=K, stride, padding, output_padding)."""
    w = np.asarray(w_pt, np.float32)               # (Cin, Cout, K, K)
    b = np.asarray(b_pt, np.float32)
    Cin, Cout, K, _ = w.shape
    Hout = (Hin - 1) * stride - 2 * padding + K + out_pad
    Wout = (Win - 1) * stride - 2 * padding + K + out_pad
    M = np.zeros((Cin * Hin * Win, Cout * Hout * Wout), np.float32)
    out_ch_off = np.arange(Cout) * (Hout * Wout)
    for ih in range(Hin):
        for iw in range(Win):
            for kh in range(K):
                for kw in range(K):
                    oh = ih * stride - padding + kh
                    ow = iw * stride - padding + kw
                    if 0 <= oh < Hout and 0 <= ow < Wout:
                        ib = ih * Win + iw
                        ob = oh * Wout + ow
                        for ci in range(Cin):
                            M[ci * Hin * Win + ib, out_ch_off + ob] += w[ci, :, kh, kw]
    bias = np.repeat(b, Hout * Wout)               # NCHW-flat bias
    return M, bias, Hout, Wout


def _pack_decoder(params, *, filters, image_size):
    """Fold fc+convT2 into (W_A, b_A) and convT1 into (W_B, b_B)."""
    fc_w, fc_b, w2, b2, w1, b1 = [np.asarray(p, np.float32) for p in params]
    H0 = image_size // 4
    M2, b2f, H1, W1 = _convT_as_matrix(w2, b2, H0, H0)     # (128, 256)
    M1, b1f, H2, W2 = _convT_as_matrix(w1, b1, H1, W1)     # (256, 256)
    # fc (row form): y0 = x @ fc_w.T + fc_b  (NCHW-flat, matches x.view(...))
    W_A = fc_w.T @ M2                                       # (L, C1*H1*W1)
    b_A = fc_b @ M2 + b2f                                    # (C1*H1*W1,)
    W_B = M1                                                 # (C1*H1*W1, H2*W2)
    b_B = b1f                                                # (H2*W2,)
    return (jnp.asarray(W_A), jnp.asarray(b_A[None, :]),
            jnp.asarray(W_B), jnp.asarray(b_B[None, :]), H2, W2)


# ------------------------------ Pallas kernel -------------------------------


def _decoder_kernel(x_ref, wa_ref, ba_ref, wb_ref, bb_ref, o_ref):
    f32 = jnp.float32
    # fc + ConvTranspose#2 (folded) + ReLU
    h = jnp.dot(x_ref[...], wa_ref[...], preferred_element_type=f32) + ba_ref[...]
    h = jnp.maximum(h, 0.0)
    # ConvTranspose#1 (folded) + sigmoid, lane-dense (BB, 256) store
    z = jnp.dot(h, wb_ref[...], preferred_element_type=f32) + bb_ref[...]
    o_ref[...] = 1.0 / (1.0 + jnp.exp(-z))


# ------------------------------- JAX wrapper ---------------------------------


def _round_up(v, m):
    return (v + m - 1) // m * m


def decoder_forward(x, params, *, filters, image_size):
    W_A, b_A, W_B, b_B, H2, W2 = _pack_decoder(
        params, filters=filters, image_size=image_size)

    x = jnp.asarray(x, jnp.float32)
    B, L = x.shape
    N2 = W_B.shape[1]

    # Sublane-aligned batch blocks (multiple of 8 -> unmasked stores); grid
    # over batch so v7x can shard blocks across its two TensorCores.
    BB = min(128, _round_up(B, 8))
    B_pad = _round_up(B, BB)
    x_p = jnp.pad(x, ((0, B_pad - B), (0, 0)))

    out = pl.pallas_call(
        _decoder_kernel,
        out_shape=jax.ShapeDtypeStruct((B_pad, N2), jnp.float32),
        grid=(B_pad // BB,),
        in_specs=[
            pl.BlockSpec((BB, L), lambda i: (i, 0)),
            pl.BlockSpec(W_A.shape, lambda i: (0, 0)),   # weights: constant block
            pl.BlockSpec(b_A.shape, lambda i: (0, 0)),
            pl.BlockSpec(W_B.shape, lambda i: (0, 0)),
            pl.BlockSpec(b_B.shape, lambda i: (0, 0)),
        ],
        out_specs=pl.BlockSpec((BB, N2), lambda i: (i, 0)),
        compiler_params=pltpu.CompilerParams(
            dimension_semantics=("parallel",)),
    )(x_p, W_A, b_A, W_B, b_B)

    return out[:B].reshape(B, 1, H2, W2)   # metadata-only reshape to NCHW


# ---------------------------- numpy reference --------------------------------


def _np_conv_transpose(x, w, b, stride=2, padding=1, out_pad=1):
    B, Ci, H, W = x.shape
    Co, K = w.shape[1], w.shape[2]
    Ho = (H - 1) * stride - 2 * padding + K + out_pad
    Wo = (W - 1) * stride - 2 * padding + K + out_pad
    out = np.zeros((B, Co, Ho, Wo), np.float32)
    for ih in range(H):
        for iw in range(W):
            for kh in range(K):
                for kw in range(K):
                    oh = ih * stride - padding + kh
                    ow = iw * stride - padding + kw
                    if 0 <= oh < Ho and 0 <= ow < Wo:
                        out[:, :, oh, ow] += x[:, :, ih, iw] @ w[:, :, kh, kw]
    return out + b[None, :, None, None]


def decoder_ref_np(x, params, *, filters, image_size):
    fc_w, fc_b, w2, b2, w1, b1 = [np.asarray(p, np.float32) for p in params]
    x = np.asarray(x, np.float32)
    h = x @ fc_w.T + fc_b
    h = h.reshape(x.shape[0], 2 * filters, image_size // 4, image_size // 4)
    h = np.maximum(_np_conv_transpose(h, w2, b2), 0.0)
    h = 1.0 / (1.0 + np.exp(-_np_conv_transpose(h, w1, b1)))
    return h


# ---------------------------------- main -------------------------------------


if __name__ == "__main__":
    filters, kernel_size, latent_dim, image_size = 4, 3, 8, 16
    batch = 2
    fc_out = 2 * filters * (image_size // 4) ** 2  # 128

    keys = jax.random.split(jax.random.PRNGKey(0), 7)
    fc_w = 0.1 * jax.random.normal(keys[0], (fc_out, latent_dim), jnp.float32)
    fc_b = 0.1 * jax.random.normal(keys[1], (fc_out,), jnp.float32)
    w2 = 0.1 * jax.random.normal(
        keys[2], (2 * filters, filters, kernel_size, kernel_size), jnp.float32)
    b2 = 0.1 * jax.random.normal(keys[3], (filters,), jnp.float32)
    w1 = 0.1 * jax.random.normal(
        keys[4], (filters, 1, kernel_size, kernel_size), jnp.float32)
    b1 = 0.1 * jax.random.normal(keys[5], (1,), jnp.float32)
    x = jax.random.normal(keys[6], (batch, latent_dim), jnp.float32)

    params = (fc_w, fc_b, w2, b2, w1, b1)

    out = decoder_forward(x, params, filters=filters, image_size=image_size)
    out = jax.block_until_ready(out)
    assert out.shape == (batch, 1, image_size, image_size), out.shape

    ref = decoder_ref_np(x, params, filters=filters, image_size=image_size)
    np.testing.assert_allclose(np.asarray(out), ref, rtol=1e-4, atol=1e-5)

    print("KERNEL_OK")
</pallas_src>

<mosaic_0001>
module attributes {stable_mosaic.version = 11 : i64} {
  func.func @_decoder_kernel(%arg0: i32, %arg1: memref<8x8xf32, #tpu.memory_space<vmem>>, %arg2: memref<8x256xf32, #tpu.memory_space<vmem>>, %arg3: memref<1x256xf32, #tpu.memory_space<vmem>>, %arg4: memref<256x256xf32, #tpu.memory_space<vmem>>, %arg5: memref<1x256xf32, #tpu.memory_space<vmem>>, %arg6: memref<8x256xf32, #tpu.memory_space<vmem>>) attributes {dimension_semantics = [#tpu.dimension_semantics<parallel>], iteration_bounds = array<i64: 1>, scalar_prefetch = 0 : i64, scratch_operands = 0 : i64, tpu.core_type = #tpu.core_type<tc>, window_params = [{transform_indices = @transform_0, window_bounds = array<i64: 8, 8>}, {pipeline_mode = #tpu.pipeline_mode<synchronous>, transform_indices = @transform_1, window_bounds = array<i64: 8, 256>}, {pipeline_mode = #tpu.pipeline_mode<synchronous>, transform_indices = @transform_2, window_bounds = array<i64: 1, 256>}, {pipeline_mode = #tpu.pipeline_mode<synchronous>, transform_indices = @transform_3, window_bounds = array<i64: 256, 256>}, {pipeline_mode = #tpu.pipeline_mode<synchronous>, transform_indices = @transform_4, window_bounds = array<i64: 1, 256>}, {transform_indices = @transform_5, window_bounds = array<i64: 8, 256>}]} {
    %c0 = arith.constant 0 : index
    %c0_0 = arith.constant 0 : index
    %0 = vector.load %arg1[%c0, %c0_0] : memref<8x8xf32, #tpu.memory_space<vmem>>, vector<8x8xf32>
    %c0_1 = arith.constant 0 : index
    %c0_2 = arith.constant 0 : index
    %1 = vector.load %arg2[%c0_1, %c0_2] : memref<8x256xf32, #tpu.memory_space<vmem>>, vector<8x256xf32>
    %cst = arith.constant dense<0.000000e+00> : vector<8x256xf32>
    %2 = tpu.matmul %0, %1, %cst {dimension_numbers = #tpu.dot_dimension_numbers<[1], [0], [0], [1], [0, 0, 1, 1], [], []>} : vector<8x8xf32>, vector<8x256xf32>, vector<8x256xf32> -> vector<8x256xf32>
    %c0_3 = arith.constant 0 : index
    %c0_4 = arith.constant 0 : index
    %3 = vector.load %arg3[%c0_3, %c0_4] : memref<1x256xf32, #tpu.memory_space<vmem>>, vector<1x256xf32>
    %4 = vector.broadcast %3 : vector<1x256xf32> to vector<8x256xf32>
    %5 = arith.addf %2, %4 : vector<8x256xf32>
    %cst_5 = arith.constant 0.000000e+00 : f32
    %6 = vector.broadcast %cst_5 : f32 to vector<8x256xf32>
    %7 = arith.maximumf %5, %6 : vector<8x256xf32>
    %c0_6 = arith.constant 0 : index
    %c0_7 = arith.constant 0 : index
    %8 = vector.load %arg4[%c0_6, %c0_7] : memref<256x256xf32, #tpu.memory_space<vmem>>, vector<256x256xf32>
    %cst_8 = arith.constant dense<0.000000e+00> : vector<8x256xf32>
    %9 = tpu.matmul %7, %8, %cst_8 {dimension_numbers = #tpu.dot_dimension_numbers<[1], [0], [0], [1], [0, 0, 1, 1], [], []>} : vector<8x256xf32>, vector<256x256xf32>, vector<8x256xf32> -> vector<8x256xf32>
    %c0_9 = arith.constant 0 : index
    %c0_10 = arith.constant 0 : index
    %10 = vector.load %arg5[%c0_9, %c0_10] : memref<1x256xf32, #tpu.memory_space<vmem>>, vector<1x256xf32>
    %11 = vector.broadcast %10 : vector<1x256xf32> to vector<8x256xf32>
    %12 = arith.addf %9, %11 : vector<8x256xf32>
    %cst_11 = arith.constant 0.000000e+00 : f32
    %13 = vector.broadcast %cst_11 : f32 to vector<8x256xf32>
    %14 = arith.subf %13, %12 : vector<8x256xf32>
    %15 = math.exp %14 : vector<8x256xf32>
    %cst_12 = arith.constant 1.000000e+00 : f32
    %16 = vector.broadcast %cst_12 : f32 to vector<8x256xf32>
    %17 = arith.addf %16, %15 : vector<8x256xf32>
    %cst_13 = arith.constant 1.000000e+00 : f32
    %18 = vector.broadcast %cst_13 : f32 to vector<8x256xf32>
    %19 = arith.divf %18, %17 : vector<8x256xf32>
    %c0_14 = arith.constant 0 : index
    %c0_15 = arith.constant 0 : index
    %20 = vector.load %arg6[%c0_14, %c0_15] : memref<8x256xf32, #tpu.memory_space<vmem>>, vector<8x256xf32>
    tpu.vector_store %arg6[%c0_14, %c0_15], %19 {strides = array<i32>} : memref<8x256xf32, #tpu.memory_space<vmem>>, vector<8x256xf32>,
    return
  }
  func.func @transform_0(%arg0: i32) -> (i32, i32) {
    %c0_i32 = arith.constant 0 : i32
    %c0_i32_0 = arith.constant 0 : i32
    return %arg0, %c0_i32 : i32, i32
  }
  func.func @transform_1(%arg0: i32) -> (i32, i32) {
    %c0_i32 = arith.constant 0 : i32
    %c0_i32_0 = arith.constant 0 : i32
    %c0_i32_1 = arith.constant 0 : i32
    return %c0_i32, %c0_i32_0 : i32, i32
  }
  func.func @transform_2(%arg0: i32) -> (i32, i32) {
    %c0_i32 = arith.constant 0 : i32
    %c0_i32_0 = arith.constant 0 : i32
    %c0_i32_1 = arith.constant 0 : i32
    return %c0_i32, %c0_i32_0 : i32, i32
  }
  func.func @transform_3(%arg0: i32) -> (i32, i32) {
    %c0_i32 = arith.constant 0 : i32
    %c0_i32_0 = arith.constant 0 : i32
    %c0_i32_1 = arith.constant 0 : i32
    return %c0_i32, %c0_i32_0 : i32, i32
  }
  func.func @transform_4(%arg0: i32) -> (i32, i32) {
    %c0_i32 = arith.constant 0 : i32
    %c0_i32_0 = arith.constant 0 : i32
    %c0_i32_1 = arith.constant 0 : i32
    return %c0_i32, %c0_i32_0 : i32, i32
  }
  func.func @transform_5(%arg0: i32) -> (i32, i32) {
    %c0_i32 = arith.constant 0 : i32
    %c0_i32_0 = arith.constant 0 : i32
    return %arg0, %c0_i32 : i32, i32
  }
}

</mosaic_0001>

<bundles_post_ra>
// kernel: tpu_custom_call.1
= control target key start
LH: loop header
LB: loop body
LE: loop exit
PB: predicated region body
PF: predicated region fallthrough
CT: control target
= control target key end

     0   :  { %10 = vsyncpa [#allocation3], 0  ;;  %s542_s0 = inlined_call_operand.hbm [shape: f32[8,8], index: 0, kind: input, shape index: {}]   ;;  %s543_s1 = inlined_call_operand.hbm [shape: f32[8,256], index: 1, kind: input, shape index: {}]   ;;  %s544_s2 = inlined_call_operand.hbm [shape: f32[1,256], index: 2, kind: input, shape index: {}]   ;;  %s545_s3 = inlined_call_operand.hbm [shape: f32[256,256], index: 3, kind: input, shape index: {}]   ;;  %s546_s4 = inlined_call_operand.vmem [shape: f32[1,256], index: 4, kind: input, shape index: {}]   ;;  %s547_s5 = inlined_call_operand.hbm [shape: f32[8,256], index: 5, kind: output, shape index: {}]  }
   0x1   :  { %11 = vsyncpa [#allocation6], 0 }
   0x2   :  { %12 = vsyncpa [#allocation9], 0  ;;  %s30_s20 = sshll.u32 %s543_s1, 4  ;;  %s31_s20 = int_to_ptr.hbm [resolvable:$true] %s30_s20 }
   0x3   :  { %13 = vsyncpa [#allocation4], 0  ;;  %s487_s21 = smov [#allocation5]   ;;  %s19_s25 = sshll.u32 %s542_s0, 4  ;;  %s20_s25 = int_to_ptr.hbm [resolvable:$true] %s19_s25 }
   0x4   :  { %s32_s22 = sshll.u32 %s487_s21, 4  ;;  %s488_s26 = smov [#allocation2]   ;;  %s33_s22 = int_to_ptr.vmem [resolvable:$true] %s32_s22 }
   0x5   :  { %35 = dma.hbm_to_vmem [thread:$0]  %s31_s20, 256, %s33_s22, [#allocation6]  }
   0x6   :  { %s21_s27 = sshll.u32 %s488_s26, 4  ;;  %s41_s30 = sshll.u32 %s544_s2, 4  ;;  %s22_s27 = int_to_ptr.vmem [resolvable:$true] %s21_s27  ;;  %s42_s30 = int_to_ptr.hbm [resolvable:$true] %s41_s30 }
   0x7   :  { %24 = dma.hbm_to_vmem [thread:$0]  %s20_s25, 128, %s22_s27, [#allocation3]  }
   0x8   :  { %s51_s7 = sshll.u32 %s545_s3, 4  ;;  %s489_s8 = smov [#allocation7]   ;;  %s52_s7 = int_to_ptr.hbm [resolvable:$true] %s51_s7 }
   0x9   :  { %s43_s9 = sshll.u32 %s489_s8, 4  ;;  %s490_s0 = smov [#allocation8]   ;;  %s44_s9 = int_to_ptr.vmem [resolvable:$true] %s43_s9 }
   0xa   :  { %46 = dma.hbm_to_vmem [thread:$0]  %s42_s30, 32, %s44_s9, [#allocation6]  }
   0xb   :  { %s53_s10 = sshll.u32 %s490_s0, 4  ;;  %s491_s11 = smov 256   ;;  %s54_s10 = int_to_ptr.vmem [resolvable:$true] %s53_s10 }
   0xc   :  { %s492_s12 = smov 16  }
   0xd   :  { %59 = dma.hbm_to_vmem [thread:$0]  %s52_s7, 8192, %s54_s10, [#allocation9], %s491_s11, %s491_s11, %s492_s12  }
   0xe   :  { %479 = dma.done.wait [#allocation3], 128  }
   0xf   :  { %480 = vsyncadd [#allocation3], 4294967168 }
  0x10   :  { %481 = dma.done.wait [#allocation6], 288  }
  0x11   :  { %482 = vsyncadd [#allocation6], 4294967008 }
  0x12   :  { %483 = dma.done.wait [#allocation9], 8192  }
  0x13   :  { %484 = vsyncadd [#allocation9], 4294959104  ;;  %vm87_vm0 = vcmask 64512   ;;  %v79_v0 = vld [vmem:[#allocation5] sm:$0xff]  ;;  %v78_v1 = vld [vmem:[#allocation2] sm:$0xff]  ;;  %s330_s16 = sshll.u32 %s547_s5, 4  ;;  %s331_s16 = int_to_ptr.hbm [resolvable:$true] %s330_s16 }
  0x14   :  { %v80_v2 = vld [vmem:[#allocation5 + $0x8] sm:$0xff]  ;;  %106 = vmatpush.msra.mxu0 %v79_v0  ;;  %v161_v5 = vld [vmem:[#allocation8 + $0xe0] sm:$0xff]  ;;  %v162_v7 = vld [vmem:[#allocation8 + $0xe8] sm:$0xff] }
  0x15   :  { %126 = vmatpush.msra.mxu1 %v80_v2  ;;  %v163_v3 = vld [vmem:[#allocation8 + $0xf0] sm:$0xff]  ;;  %v164_v4 = vld [vmem:[#allocation8 + $0xf8] sm:$0xff]  ;;  %342 = vmatmul.msk.f32.vlgmr.msra.gmra.mxu0 %vm87_vm0, %v78_v1  ;;  %v193_v9 = vld [vmem:[#allocation8 + $0x1e0] sm:$0xff] }
  0x16   :  { %343 = vmatmul.msk.f32.vlgmr.msra.gmra.mxu1 %vm87_vm0, %v78_v1  ;;  %v195_v6 = vld [vmem:[#allocation8 + $0x1f0] sm:$0xff]  ;;  %v196_v8 = vld [vmem:[#allocation8 + $0x1f8] sm:$0xff]  ;;  %203 = vmatpush.msra.mxu2 %v163_v3  ;;  %v194_v12 = vld [vmem:[#allocation8 + $0x1e8] sm:$0xff] }
  0x17   :  { %243 = vmatpush.msrb.mxu0 %v164_v4  ;;  %223 = vmatpush.msra.mxu3 %v195_v6  ;;  %v159_v10 = vld [vmem:[#allocation8 + $0xd0] sm:$0xff]  ;;  %v160_v11 = vld [vmem:[#allocation8 + $0xd8] sm:$0xff]  ;;  %v157_v15 = vld [vmem:[#allocation8 + $0xc0] sm:$0xff] }
  0x18   :  { %263 = vmatpush.msrb.mxu1 %v196_v8  ;;  %204 = vmatpush.msra.mxu2 %v161_v5  ;;  %v191_v13 = vld [vmem:[#allocation8 + $0x1d0] sm:$0xff]  ;;  %v192_v14 = vld [vmem:[#allocation8 + $0x1d8] sm:$0xff]  ;;  %v158_v16 = vld [vmem:[#allocation8 + $0xc8] sm:$0xff] }
  0x19   :  { %244 = vmatpush.msrb.mxu0 %v162_v7  ;;  %224 = vmatpush.msra.mxu3 %v193_v9  ;;  %v189_v17 = vld [vmem:[#allocation8 + $0x1c0] sm:$0xff]  ;;  %v190_v18 = vld [vmem:[#allocation8 + $0x1c8] sm:$0xff]  ;;  %v155_v19 = vld [vmem:[#allocation8 + $0xb0] sm:$0xff] }
  0x1a   :  { %264 = vmatpush.msrb.mxu1 %v194_v12  ;;  %205 = vmatpush.msra.mxu2 %v159_v10  ;;  %v156_v20 = vld [vmem:[#allocation8 + $0xb8] sm:$0xff]  ;;  %v187_v21 = vld [vmem:[#allocation8 + $0x1b0] sm:$0xff]  ;;  %v153_v23 = vld [vmem:[#allocation8 + $0xa0] sm:$0xff] }
  0x1b   :  { %245 = vmatpush.msrb.mxu0 %v160_v11  ;;  %225 = vmatpush.msra.mxu3 %v191_v13  ;;  %v188_v22 = vld [vmem:[#allocation8 + $0x1b8] sm:$0xff]  ;;  %v154_v24 = vld [vmem:[#allocation8 + $0xa8] sm:$0xff]  ;;  %v185_v25 = vld [vmem:[#allocation8 + $0x1a0] sm:$0xff] }
  0x1c   :  { %265 = vmatpush.msrb.mxu1 %v192_v14  ;;  %206 = vmatpush.msra.mxu2 %v157_v15  ;;  %v186_v26 = vld [vmem:[#allocation8 + $0x1a8] sm:$0xff]  ;;  %v151_v27 = vld [vmem:[#allocation8 + $0x90] sm:$0xff]  ;;  %v152_v28 = vld [vmem:[#allocation8 + $0x98] sm:$0xff] }
  0x1d   :  { %246 = vmatpush.msrb.mxu0 %v158_v16  ;;  %226 = vmatpush.msra.mxu3 %v189_v17  ;;  %v183_v29 = vld [vmem:[#allocation8 + $0x190] sm:$0xff]  ;;  %v184_v30 = vld [vmem:[#allocation8 + $0x198] sm:$0xff]  ;;  %v149_v31 = vld [vmem:[#allocation8 + $0x80] sm:$0xff] }
  0x1e   :  { %266 = vmatpush.msrb.mxu1 %v190_v18  ;;  %207 = vmatpush.msra.mxu2 %v155_v19  ;;  %v150_v32 = vld [vmem:[#allocation8 + $0x88] sm:$0xff]  ;;  %v181_v33 = vld [vmem:[#allocation8 + $0x180] sm:$0xff]  ;;  %v147_v35 = vld [vmem:[#allocation8 + $0x70] sm:$0xff] }
  0x1f   :  { %247 = vmatpush.msrb.mxu0 %v156_v20  ;;  %227 = vmatpush.msra.mxu3 %v187_v21  ;;  %v182_v34 = vld [vmem:[#allocation8 + $0x188] sm:$0xff]  ;;  %v148_v36 = vld [vmem:[#allocation8 + $0x78] sm:$0xff]  ;;  %v179_v37 = vld [vmem:[#allocation8 + $0x170] sm:$0xff] }
  0x20   :  { %267 = vmatpush.msrb.mxu1 %v188_v22  ;;  %208 = vmatpush.msra.mxu2 %v153_v23  ;;  %v180_v38 = vld [vmem:[#allocation8 + $0x178] sm:$0xff]  ;;  %v145_v39 = vld [vmem:[#allocation8 + $0x60] sm:$0xff]  ;;  %v146_v40 = vld [vmem:[#allocation8 + $0x68] sm:$0xff] }
  0x21   :  { %248 = vmatpush.msrb.mxu0 %v154_v24  ;;  %228 = vmatpush.msra.mxu3 %v185_v25  ;;  %v177_v41 = vld [vmem:[#allocation8 + $0x160] sm:$0xff]  ;;  %v178_v42 = vld [vmem:[#allocation8 + $0x168] sm:$0xff]  ;;  %v143_v43 = vld [vmem:[#allocation8 + $0x50] sm:$0xff] }
  0x22   :  { %268 = vmatpush.msrb.mxu1 %v186_v26  ;;  %209 = vmatpush.msra.mxu2 %v151_v27  ;;  %v144_v44 = vld [vmem:[#allocation8 + $0x58] sm:$0xff]  ;;  %v175_v45 = vld [vmem:[#allocation8 + $0x150] sm:$0xff]  ;;  %v141_v47 = vld [vmem:[#allocation8 + $0x40] sm:$0xff] }
  0x23   :  { %249 = vmatpush.msrb.mxu0 %v152_v28  ;;  %229 = vmatpush.msra.mxu3 %v183_v29  ;;  %v176_v46 = vld [vmem:[#allocation8 + $0x158] sm:$0xff]  ;;  %v142_v48 = vld [vmem:[#allocation8 + $0x48] sm:$0xff]  ;;  %v173_v49 = vld [vmem:[#allocation8 + $0x140] sm:$0xff] }
  0x24   :  { %269 = vmatpush.msrb.mxu1 %v184_v30  ;;  %210 = vmatpush.msra.mxu2 %v149_v31  ;;  %v174_v50 = vld [vmem:[#allocation8 + $0x148] sm:$0xff]  ;;  %v139_v51 = vld [vmem:[#allocation8 + $0x30] sm:$0xff]  ;;  %v140_v52 = vld [vmem:[#allocation8 + $0x38] sm:$0xff] }
  0x25   :  { %250 = vmatpush.msrb.mxu0 %v150_v32  ;;  %230 = vmatpush.msra.mxu3 %v181_v33  ;;  %v137_v53 = vld [vmem:[#allocation8 + $0x20] sm:$0xff]  ;;  %v171_v54 = vld [vmem:[#allocation8 + $0x130] sm:$0xff]  ;;  %v138_v55 = vld [vmem:[#allocation8 + $0x28] sm:$0xff] }
  0x26   :  { %270 = vmatpush.msrb.mxu1 %v182_v34  ;;  %211 = vmatpush.msra.mxu2 %v147_v35  ;;  %v172_v56 = vld [vmem:[#allocation8 + $0x138] sm:$0xff]  ;;  %v135_v57 = vld [vmem:[#allocation8 + $0x10] sm:$0xff]  ;;  %v169_v58 = vld [vmem:[#allocation8 + $0x120] sm:$0xff] }
  0x27   :  { %251 = vmatpush.msrb.mxu0 %v148_v36  ;;  %231 = vmatpush.msra.mxu3 %v179_v37  ;;  %v136_v59 = vld [vmem:[#allocation8 + $0x18] sm:$0xff]  ;;  %v170_v60 = vld [vmem:[#allocation8 + $0x128] sm:$0xff]  ;;  %v133_v61 = vld [vmem:[#allocation8] sm:$0xff] }
  0x28   :  { %271 = vmatpush.msrb.mxu1 %v180_v38  ;;  %212 = vmatpush.msra.mxu2 %v145_v39  ;;  %v167_v62 = vld [vmem:[#allocation8 + $0x110] sm:$0xff]  ;;  %v134_v63 = vld [vmem:[#allocation8 + $0x8] sm:$0xff]  ;;  %v168_v0 = vld [vmem:[#allocation8 + $0x118] sm:$0xff] }
  0x29   :  { %252 = vmatpush.msrb.mxu0 %v146_v40  ;;  %232 = vmatpush.msra.mxu3 %v177_v41  ;;  %v165_v1 = vld [vmem:[#allocation8 + $0x100] sm:$0xff]  ;;  %v166_v2 = vld [vmem:[#allocation8 + $0x108] sm:$0xff]  ;;  %v81_v3 = vld [vmem:[#allocation7] sm:$0x3] }
  0x2a   :  { %272 = vmatpush.msrb.mxu1 %v178_v42  ;;  %213 = vmatpush.msra.mxu2 %v143_v43  ;;  %v83_v4 = vperm.slane %v81_v3, 0  ;;  %v84_v5 = vperm.slane %v81_v3, 1  ;;  %v197_v12 = vld [vmem:[%s546_s4] sm:$0x3]  ;;  %s493_s4 = smov [#allocation10]  }
  0x2b   :  { %253 = vmatpush.msrb.mxu0 %v144_v44  ;;  %233 = vmatpush.msra.mxu3 %v175_v45  ;;  %v200_v13 = vperm.slane %v197_v12, 1  ;;  %v199_v18 = vperm.slane %v197_v12, 0  ;;  %s328_s13 = sshll.u32 %s493_s4, 4  ;;  %s329_s13 = int_to_ptr.vmem [resolvable:$true] %s328_s13 }
  0x2c   :  { %273 = vmatpush.msrb.mxu1 %v176_v46  ;;  %214 = vmatpush.msra.mxu2 %v141_v47 }
  0x2d   :  { %254 = vmatpush.msrb.mxu0 %v142_v48  ;;  %234 = vmatpush.msra.mxu3 %v173_v49 }
  0x2e   :  { %274 = vmatpush.msrb.mxu1 %v174_v50  ;;  %215 = vmatpush.msra.mxu2 %v139_v51 }
  0x2f   :  { %255 = vmatpush.msrb.mxu0 %v140_v52  ;;  %235 = vmatpush.msra.mxu3 %v171_v54 }
  0x30   :  { %216 = vmatpush.msra.mxu2 %v137_v53  ;;  %275 = vmatpush.msrb.mxu1 %v172_v56 }
  0x31   :  { %256 = vmatpush.msrb.mxu0 %v138_v55  ;;  %236 = vmatpush.msra.mxu3 %v169_v58 }
  0x32   :  { %217 = vmatpush.msra.mxu2 %v135_v57  ;;  %276 = vmatpush.msrb.mxu1 %v170_v60 }
  0x33   :  { %257 = vmatpush.msrb.mxu0 %v136_v59  ;;  %237 = vmatpush.msra.mxu3 %v167_v62 }
  0x34   :  { %218 = vmatpush.msra.mxu2 %v133_v61  ;;  %277 = vmatpush.msrb.mxu1 %v168_v0 }
  0x35   :  { %258 = vmatpush.msrb.mxu0 %v134_v63  ;;  %238 = vmatpush.msra.mxu3 %v165_v1 }
  0x36   :  { %278 = vmatpush.msrb.mxu1 %v166_v2 }
  0x92   :  { %v108_v6 = vpop.f32.mrf.mxu0 }
  0x93   :  { %v128_v7 = vpop.f32.mrf.mxu1  ;;  %v109_v8 = vadd.f32 %v108_v6, %v83_v4 }
  0x94   :  { %v129_v9 = vadd.f32 %v128_v7, %v84_v5 }
  0x95   :  { %v131_v10 = vmax.f32 %v109_v8, 0.0 }
  0x96   :  { %v132_v11 = vmax.f32 %v129_v9, 0.0 }
  0x97   :  { %219 = vmatmul.f32.vlgmr.msra.gmra.mxu2 %v131_v10  ;;  %259 = vmatmul.f32.vlgmr.msrb.gmra.mxu0 %v131_v10 }
  0x98   :  { %239 = vmatmul.f32.vlgmr.msra.gmra.mxu3 %v132_v11  ;;  %279 = vmatmul.f32.vlgmr.msrb.gmra.mxu1 %v132_v11 }
 0x114   :  { %v260_v14 = vpop.f32.mrf.mxu0 }
 0x115   :  { %v261_v15 = vadd.f32 %v260_v14, %v200_v13  ;;  %v280_v16 = vpop.f32.mrf.mxu1 }
 0x117   :  { %v281_v17 = vadd.f32 %v280_v16, %v261_v15 }
 0x119   :  { %v284_v19 = vsub.f32 0.0, %v281_v17 }
 0x11a   :  { %v220_v20 = vpop.f32.mrf.mxu2 }
 0x11b   :  { %v287_v21 = vmul.f32 1.442695, %v284_v19  ;;  %v221_v22 = vadd.f32 %v220_v20, %v199_v18  ;;  %v240_v23 = vpop.f32.mrf.mxu3 }
 0x11d   :  { %351 = vpow2.f32 %v287_v21  ;;  %v241_v24 = vadd.f32 %v240_v23, %v221_v22 }
 0x11f   :  { %v283_v25 = vsub.f32 0.0, %v241_v24 }
 0x121   :  { %v285_v26 = vmul.f32 1.442695, %v283_v25 }
 0x123   :  { %v352_v27 = vpop.eup %351  ;;  %353 = vpow2.f32 %v285_v26 }
 0x124   :  { %v290_v28 = vadd.f32 1.0, %v352_v27 }
 0x126   :  { %355 = vrcp.f32 %v290_v28  ;;  %v317_v34 = vand.u32 2147483648, %v290_v28  ;;  %v315_v36 = vand.u32 2147483647, %v290_v28  ;;  %vm311_vm2 = vweird.f32 %v290_v28 }
 0x128   :  { %v318_v40 = vor.u32 1.1754944e-38, %v317_v34  ;;  %vm316_vm4 = vcmp.eq.f32.partialorder %v315_v36, 8.507059e+37 }
 0x129   :  { %v354_v29 = vpop.eup %353 }
 0x12a   :  { %v289_v30 = vadd.f32 1.0, %v354_v29 }
 0x12c   :  { %v356_v31 = vpop.eup %355  ;;  %357 = vrcp.f32 %v289_v30  ;;  %v302_v43 = vand.u32 2147483648, %v289_v30  ;;  %v300_v46 = vand.u32 2147483647, %v289_v30  ;;  %vm296_vm6 = vweird.f32 %v289_v30 }
 0x12d   :  { %v307_v32 = vmul.f32 %v356_v31, %v290_v28  ;;  %vm312_vm1 = vweird.f32 %v356_v31 }
 0x12e   :  { %vm313_vm3 = vmor %vm311_vm2, %vm312_vm1  ;;  %v303_v48 = vor.u32 1.1754944e-38, %v302_v43  ;;  %vm301_vm8 = vcmp.eq.f32.partialorder %v300_v46, 8.507059e+37 }
 0x12f   :  { %v308_v33 = vsub.f32 1.0, %v307_v32 }
 0x131   :  { %v309_v35 = vmul.f32 %v356_v31, %v308_v33 }
 0x132   :  { %v358_v37 = vpop.eup %357 }
 0x133   :  { %v292_v38 = vmul.f32 %v358_v37, %v289_v30  ;;  %v310_v39 = vadd.f32 %v356_v31, %v309_v35  ;;  %vm297_vm5 = vweird.f32 %v358_v37 }
 0x134   :  { %vm298_vm7 = vmor %vm296_vm6, %vm297_vm5 }
 0x135   :  { %v293_v41 = vsub.f32 1.0, %v292_v38  ;;  %v314_v42 = vsel %vm313_vm3, %v356_v31, %v310_v39 }
 0x136   :  { %v319_v44 = vsel %vm316_vm4, %v318_v40, %v314_v42 }
 0x137   :  { %v294_v45 = vmul.f32 %v358_v37, %v293_v41  ;;  %322 = vst [vmem:[#allocation10 + $0x8] sm:$0xff] %v319_v44 }
 0x139   :  { %v295_v47 = vadd.f32 %v358_v37, %v294_v45 }
 0x13b   :  { %v299_v49 = vsel %vm298_vm7, %v358_v37, %v295_v47 }
 0x13c   :  { %v304_v50 = vsel %vm301_vm8, %v303_v48, %v299_v49 }
 0x13d   :  { %321 = vst [vmem:[#allocation10] sm:$0xff] %v304_v50 }
 0x13e   :  { %333 = dma.vmem_to_hbm [thread:$0]  %s329_s13, 256, %s331_s16, [#allocation4]  }
 0x13f   :  { %485 = dma.done.wait [#allocation4], 256  }
 0x140   :  { %486 = vsyncadd [#allocation4], 4294967040 }
 0x141   :  { %338 = vsyncpa [#allocation3], 1 }
 0x142   :  { %339 = vsyncpa [#allocation6], 1 }
 0x143   :  { %340 = vsyncpa [#allocation9], 1 }
 0x144   :  { %341 = vsyncpa [#allocation4], 1 }

</bundles_post_ra>
